<compile_context>
chip_gen: v5e
topology: v5e:2x2
jax: 0.10.0
libtpu: 0.0.40
codegen_flags: <defaults>
</compile_context>

<pallas_src>
import math

import jax
import jax.numpy as jnp
from jax.experimental import pallas as pl
from jax.experimental.pallas import tpu as pltpu


# ---------------------------------------------------------------------------
# Model dimensions (trajectory_dim = 64, consistent with the module)
# ---------------------------------------------------------------------------
TRAJ_DIM = 64               # trajectory_dim
TIME_EMB = 64               # sinusoidal timestep embedding width
HALF_EMB = TIME_EMB // 2    # 32 sin + 32 cos
HIDDEN   = 128
OUT_DIM  = TRAJ_DIM         # noise prediction has the same shape as x
MAX_PERIOD = 10000.0
MAX_TB   = 2048             # max batch tile (multiple of 8)


def _round_up(n, m):
    return ((n + m - 1) // m) * m


# ---------------------------------------------------------------------------
# Pallas kernel: fused timestep embedding + 3-layer MLP noise predictor
# ---------------------------------------------------------------------------
def _noise_pred_kernel(x_ref, t_ref, freqs_ref, phase_ref,
                       w1x_ref, w1e_ref, b1_ref,
                       w2_ref, b2_ref, w3_ref, b3_ref,
                       o_ref):
    x = x_ref[...]                          # (TB, TRAJ_DIM)
    t = t_ref[...]                          # (TB, 1) float32

    # --- fused sinusoidal timestep embedding via phase table ---
    # emb = [sin(t*f), cos(t*f)] == sin(t*[f,f] + [0, pi/2])   (EUP sin)
    args = t * freqs_ref[...] + phase_ref[...]     # (TB, TIME_EMB)
    emb = jnp.sin(args)

    # --- layer 1: equivalent to concat([x, emb]) @ W1 + b1 ---
    z1 = jnp.dot(x, w1x_ref[...], preferred_element_type=jnp.float32)
    z1 = z1 + jnp.dot(emb, w1e_ref[...], preferred_element_type=jnp.float32)
    z1 = z1 + b1_ref[...]                   # (1, HIDDEN) sublane-broadcast
    h1 = z1 * jax.nn.sigmoid(z1)            # SiLU (exp on EUP)

    # --- layer 2 ---
    z2 = jnp.dot(h1, w2_ref[...], preferred_element_type=jnp.float32) + b2_ref[...]
    h2 = z2 * jax.nn.sigmoid(z2)

    # --- output layer: true 64-wide output (no padding, no wrapper slice) ---
    z3 = jnp.dot(h2, w3_ref[...], preferred_element_type=jnp.float32) + b3_ref[...]
    o_ref[...] = z3.astype(o_ref.dtype)


# ---------------------------------------------------------------------------
# Wrapper: batch-tiled pallas_call with VMEM-resident weights
# ---------------------------------------------------------------------------
def noise_pred_net_pallas(x, timesteps, params):
    """x: (B, TRAJ_DIM) f32, timesteps: (B,) int32 -> (B, OUT_DIM) f32."""
    B = x.shape[0]

    # Pad only to a sublane multiple (8); trailing partial TB blocks are
    # handled by the cdiv grid (rows are independent, OOB writes masked).
    Bp = _round_up(B, 8)
    if Bp != B:
        x = jnp.pad(x, ((0, Bp - B), (0, 0)))
        timesteps = jnp.pad(timesteps, ((0, Bp - B),))
    t_col = timesteps.astype(jnp.float32).reshape(Bp, 1)

    # Tile: as large as possible (overhead amortization) but at least 2 grid
    # steps whenever Bp >= 16 so the parallel axis shards across v7x's 2 TCs.
    TB = min(MAX_TB, max(8, _round_up(pl.cdiv(Bp, 2), 8)))
    grid = (pl.cdiv(Bp, TB),)

    # small constant tables, read once into VMEM
    freqs = jnp.exp(
        -math.log(MAX_PERIOD)
        * jnp.arange(HALF_EMB, dtype=jnp.float32) / HALF_EMB)
    freqs_ext = jnp.concatenate([freqs, freqs]).reshape(1, TIME_EMB)
    phase = jnp.concatenate(
        [jnp.zeros((HALF_EMB,), jnp.float32),
         jnp.full((HALF_EMB,), jnp.pi / 2, jnp.float32)]).reshape(1, TIME_EMB)

    def batch_spec(width):
        return pl.BlockSpec((TB, width), lambda i: (i, 0))

    def const_spec(shape):
        return pl.BlockSpec(shape, lambda i: (0, 0))

    flops = 2 * Bp * (TRAJ_DIM * HIDDEN + TIME_EMB * HIDDEN
                      + HIDDEN * HIDDEN + HIDDEN * OUT_DIM)
    transcendentals = Bp * (TIME_EMB + 2 * HIDDEN)
    weight_bytes = 4 * (TRAJ_DIM * HIDDEN + TIME_EMB * HIDDEN + HIDDEN
                        + HIDDEN * HIDDEN + HIDDEN
                        + HIDDEN * OUT_DIM + OUT_DIM + 2 * TIME_EMB)
    bytes_accessed = 4 * Bp * (TRAJ_DIM + 1 + OUT_DIM) + weight_bytes

    out = pl.pallas_call(
        _noise_pred_kernel,
        out_shape=jax.ShapeDtypeStruct((Bp, OUT_DIM), jnp.float32),
        grid=grid,
        in_specs=[
            batch_spec(TRAJ_DIM),              # x            (TB, 64)
            batch_spec(1),                     # timesteps    (TB, 1)
            const_spec((1, TIME_EMB)),         # freqs_ext
            const_spec((1, TIME_EMB)),         # phase
            const_spec((TRAJ_DIM, HIDDEN)),    # W1_x
            const_spec((TIME_EMB, HIDDEN)),    # W1_emb = [W1_sin; W1_cos]
            const_spec((1, HIDDEN)),           # b1
            const_spec((HIDDEN, HIDDEN)),      # W2
            const_spec((1, HIDDEN)),           # b2
            const_spec((HIDDEN, OUT_DIM)),     # W3 (true 64 cols)
            const_spec((1, OUT_DIM)),          # b3
        ],
        out_specs=batch_spec(OUT_DIM),
        compiler_params=pltpu.CompilerParams(
            dimension_semantics=("parallel",),
            vmem_limit_bytes=32 * 1024 * 1024),
        cost_estimate=pl.CostEstimate(
            flops=flops,
            transcendentals=transcendentals,
            bytes_accessed=bytes_accessed),
    )(x, t_col, freqs_ext, phase,
      params["w1_x"], params["w1_emb"], params["b1"],
      params["w2"], params["b2"], params["w3"], params["b3"])

    return out if Bp == B else out[:B]


# ---------------------------------------------------------------------------
# AdaptDiffuserModel.forward equivalent
# ---------------------------------------------------------------------------
def adapt_diffuser_forward(x, timesteps, params, task=None):
    """
    x:         (B, TRAJ_DIM) float32 trajectory
    timesteps: (B,) int32 diffusion timesteps
    task:      ignored for compute (only populates a Python dict in PyTorch)
    returns:   (B, TRAJ_DIM) predicted noise
    """
    del task  # TODO(synk): task_embeddings dict side-effect is Python state only
    return noise_pred_net_pallas(x, timesteps, params)


# ---------------------------------------------------------------------------
# Deterministic parameter init (synthetic weights, no checkpoint)
# ---------------------------------------------------------------------------
def init_params(key):
    k1x, k1s, k1c, k2, k3 = jax.random.split(key, 5)
    scale1 = 1.0 / math.sqrt(TRAJ_DIM + TIME_EMB)
    scale2 = 1.0 / math.sqrt(HIDDEN)
    w1_sin = jax.random.normal(k1s, (HALF_EMB, HIDDEN), jnp.float32) * scale1
    w1_cos = jax.random.normal(k1c, (HALF_EMB, HIDDEN), jnp.float32) * scale1
    params = {
        "w1_x":   jax.random.normal(k1x, (TRAJ_DIM, HIDDEN), jnp.float32) * scale1,
        "w1_sin": w1_sin,
        "w1_cos": w1_cos,
        # phase-table form used by the kernel: emb = sin(t*[f,f] + [0,pi/2])
        "w1_emb": jnp.concatenate([w1_sin, w1_cos], axis=0),
        "b1":     jnp.zeros((1, HIDDEN), jnp.float32),
        "w2":     jax.random.normal(k2, (HIDDEN, HIDDEN), jnp.float32) * scale2,
        "b2":     jnp.zeros((1, HIDDEN), jnp.float32),
        "w3":     jax.random.normal(k3, (HIDDEN, OUT_DIM), jnp.float32) * scale2,
        "b3":     jnp.zeros((1, OUT_DIM), jnp.float32),
    }
    return params


# ---------------------------------------------------------------------------
# Pure-JAX reference for the correctness check
# ---------------------------------------------------------------------------
def reference_forward(x, timesteps, params):
    freqs = jnp.exp(
        -math.log(MAX_PERIOD)
        * jnp.arange(HALF_EMB, dtype=jnp.float32) / HALF_EMB)
    args = timesteps.astype(jnp.float32)[:, None] * freqs[None, :]
    z1 = (x @ params["w1_x"]
          + jnp.sin(args) @ params["w1_sin"]
          + jnp.cos(args) @ params["w1_cos"]
          + params["b1"])
    h1 = z1 * jax.nn.sigmoid(z1)
    z2 = h1 @ params["w2"] + params["b2"]
    h2 = z2 * jax.nn.sigmoid(z2)
    return h2 @ params["w3"] + params["b3"]


if __name__ == "__main__":
    key = jax.random.PRNGKey(0)
    kx, kt, kp = jax.random.split(key, 3)

    B = 8
    x = jax.random.normal(kx, (B, TRAJ_DIM), jnp.float32)
    timesteps = jax.random.randint(kt, (B,), 0, 1000, dtype=jnp.int32)
    params = init_params(kp)

    out = adapt_diffuser_forward(x, timesteps, params, task="test_task")
    out = jax.block_until_ready(out)

    ref = reference_forward(x, timesteps, params)
    assert out.shape == (B, TRAJ_DIM)
    max_err = float(jnp.max(jnp.abs(out - ref)))
    # 1e-3 tolerance: in-kernel sin(x+pi/2)-as-cos & MXU passes vs XLA reference.
    assert max_err < 1e-3, f"max abs err {max_err}"

    print("KERNEL_OK")
</pallas_src>

<mosaic_0001>
module attributes {stable_mosaic.version = 11 : i64} {
  func.func @_noise_pred_kernel(%arg0: i32, %arg1: memref<8x64xf32, #tpu.memory_space<vmem>>, %arg2: memref<8x1xf32, #tpu.memory_space<vmem>>, %arg3: memref<1x64xf32, #tpu.memory_space<vmem>>, %arg4: memref<1x64xf32, #tpu.memory_space<vmem>>, %arg5: memref<64x128xf32, #tpu.memory_space<vmem>>, %arg6: memref<64x128xf32, #tpu.memory_space<vmem>>, %arg7: memref<1x128xf32, #tpu.memory_space<vmem>>, %arg8: memref<128x128xf32, #tpu.memory_space<vmem>>, %arg9: memref<1x128xf32, #tpu.memory_space<vmem>>, %arg10: memref<128x64xf32, #tpu.memory_space<vmem>>, %arg11: memref<1x64xf32, #tpu.memory_space<vmem>>, %arg12: memref<8x64xf32, #tpu.memory_space<vmem>>) attributes {dimension_semantics = [#tpu.dimension_semantics<parallel>], iteration_bounds = array<i64: 1>, scalar_prefetch = 0 : i64, scratch_operands = 0 : i64, tpu.core_type = #tpu.core_type<tc>, window_params = [{transform_indices = @transform_0, window_bounds = array<i64: 8, 64>}, {transform_indices = @transform_1, window_bounds = array<i64: 8, 1>}, {pipeline_mode = #tpu.pipeline_mode<synchronous>, transform_indices = @transform_2, window_bounds = array<i64: 1, 64>}, {pipeline_mode = #tpu.pipeline_mode<synchronous>, transform_indices = @transform_3, window_bounds = array<i64: 1, 64>}, {pipeline_mode = #tpu.pipeline_mode<synchronous>, transform_indices = @transform_4, window_bounds = array<i64: 64, 128>}, {pipeline_mode = #tpu.pipeline_mode<synchronous>, transform_indices = @transform_5, window_bounds = array<i64: 64, 128>}, {pipeline_mode = #tpu.pipeline_mode<synchronous>, transform_indices = @transform_6, window_bounds = array<i64: 1, 128>}, {pipeline_mode = #tpu.pipeline_mode<synchronous>, transform_indices = @transform_7, window_bounds = array<i64: 128, 128>}, {pipeline_mode = #tpu.pipeline_mode<synchronous>, transform_indices = @transform_8, window_bounds = array<i64: 1, 128>}, {pipeline_mode = #tpu.pipeline_mode<synchronous>, transform_indices = @transform_9, window_bounds = array<i64: 128, 64>}, {pipeline_mode = #tpu.pipeline_mode<synchronous>, transform_indices = @transform_10, window_bounds = array<i64: 1, 64>}, {transform_indices = @transform_11, window_bounds = array<i64: 8, 64>}]} {
    %c0 = arith.constant 0 : index
    %c0_0 = arith.constant 0 : index
    %0 = vector.load %arg1[%c0, %c0_0] : memref<8x64xf32, #tpu.memory_space<vmem>>, vector<8x64xf32>
    %c0_1 = arith.constant 0 : index
    %c0_2 = arith.constant 0 : index
    %1 = vector.load %arg2[%c0_1, %c0_2] : memref<8x1xf32, #tpu.memory_space<vmem>>, vector<8x1xf32>
    %c0_3 = arith.constant 0 : index
    %c0_4 = arith.constant 0 : index
    %2 = vector.load %arg3[%c0_3, %c0_4] : memref<1x64xf32, #tpu.memory_space<vmem>>, vector<1x64xf32>
    %3 = vector.broadcast %1 : vector<8x1xf32> to vector<8x64xf32>
    %4 = vector.broadcast %2 : vector<1x64xf32> to vector<8x64xf32>
    %5 = arith.mulf %3, %4 : vector<8x64xf32>
    %c0_5 = arith.constant 0 : index
    %c0_6 = arith.constant 0 : index
    %6 = vector.load %arg4[%c0_5, %c0_6] : memref<1x64xf32, #tpu.memory_space<vmem>>, vector<1x64xf32>
    %7 = vector.broadcast %6 : vector<1x64xf32> to vector<8x64xf32>
    %8 = arith.addf %5, %7 : vector<8x64xf32>
    %9 = math.sin %8 : vector<8x64xf32>
    %c0_7 = arith.constant 0 : index
    %c0_8 = arith.constant 0 : index
    %10 = vector.load %arg5[%c0_7, %c0_8] : memref<64x128xf32, #tpu.memory_space<vmem>>, vector<64x128xf32>
    %cst = arith.constant dense<0.000000e+00> : vector<8x128xf32>
    %11 = tpu.matmul %0, %10, %cst {dimension_numbers = #tpu.dot_dimension_numbers<[1], [0], [0], [1], [0, 0, 1, 1], [], []>} : vector<8x64xf32>, vector<64x128xf32>, vector<8x128xf32> -> vector<8x128xf32>
    %c0_9 = arith.constant 0 : index
    %c0_10 = arith.constant 0 : index
    %12 = vector.load %arg6[%c0_9, %c0_10] : memref<64x128xf32, #tpu.memory_space<vmem>>, vector<64x128xf32>
    %cst_11 = arith.constant dense<0.000000e+00> : vector<8x128xf32>
    %13 = tpu.matmul %9, %12, %cst_11 {dimension_numbers = #tpu.dot_dimension_numbers<[1], [0], [0], [1], [0, 0, 1, 1], [], []>} : vector<8x64xf32>, vector<64x128xf32>, vector<8x128xf32> -> vector<8x128xf32>
    %14 = arith.addf %11, %13 : vector<8x128xf32>
    %c0_12 = arith.constant 0 : index
    %c0_13 = arith.constant 0 : index
    %15 = vector.load %arg7[%c0_12, %c0_13] : memref<1x128xf32, #tpu.memory_space<vmem>>, vector<1x128xf32>
    %16 = vector.broadcast %15 : vector<1x128xf32> to vector<8x128xf32>
    %17 = arith.addf %14, %16 : vector<8x128xf32>
    %18 = arith.negf %17 : vector<8x128xf32>
    %19 = math.exp %18 : vector<8x128xf32>
    %cst_14 = arith.constant 1.000000e+00 : f32
    %20 = vector.broadcast %cst_14 : f32 to vector<8x128xf32>
    %21 = arith.addf %20, %19 : vector<8x128xf32>
    %22 = arith.divf %20, %21 : vector<8x128xf32>
    %23 = arith.mulf %17, %22 : vector<8x128xf32>
    %c0_15 = arith.constant 0 : index
    %c0_16 = arith.constant 0 : index
    %24 = vector.load %arg8[%c0_15, %c0_16] : memref<128x128xf32, #tpu.memory_space<vmem>>, vector<128x128xf32>
    %cst_17 = arith.constant dense<0.000000e+00> : vector<8x128xf32>
    %25 = tpu.matmul %23, %24, %cst_17 {dimension_numbers = #tpu.dot_dimension_numbers<[1], [0], [0], [1], [0, 0, 1, 1], [], []>} : vector<8x128xf32>, vector<128x128xf32>, vector<8x128xf32> -> vector<8x128xf32>
    %c0_18 = arith.constant 0 : index
    %c0_19 = arith.constant 0 : index
    %26 = vector.load %arg9[%c0_18, %c0_19] : memref<1x128xf32, #tpu.memory_space<vmem>>, vector<1x128xf32>
    %27 = vector.broadcast %26 : vector<1x128xf32> to vector<8x128xf32>
    %28 = arith.addf %25, %27 : vector<8x128xf32>
    %29 = arith.negf %28 : vector<8x128xf32>
    %30 = math.exp %29 : vector<8x128xf32>
    %cst_20 = arith.constant 1.000000e+00 : f32
    %31 = vector.broadcast %cst_20 : f32 to vector<8x128xf32>
    %32 = arith.addf %31, %30 : vector<8x128xf32>
    %33 = arith.divf %31, %32 : vector<8x128xf32>
    %34 = arith.mulf %28, %33 : vector<8x128xf32>
    %c0_21 = arith.constant 0 : index
    %c0_22 = arith.constant 0 : index
    %35 = vector.load %arg10[%c0_21, %c0_22] : memref<128x64xf32, #tpu.memory_space<vmem>>, vector<128x64xf32>
    %cst_23 = arith.constant dense<0.000000e+00> : vector<8x64xf32>
    %36 = tpu.matmul %34, %35, %cst_23 {dimension_numbers = #tpu.dot_dimension_numbers<[1], [0], [0], [1], [0, 0, 1, 1], [], []>} : vector<8x128xf32>, vector<128x64xf32>, vector<8x64xf32> -> vector<8x64xf32>
    %c0_24 = arith.constant 0 : index
    %c0_25 = arith.constant 0 : index
    %37 = vector.load %arg11[%c0_24, %c0_25] : memref<1x64xf32, #tpu.memory_space<vmem>>, vector<1x64xf32>
    %38 = vector.broadcast %37 : vector<1x64xf32> to vector<8x64xf32>
    %39 = arith.addf %36, %38 : vector<8x64xf32>
    %c0_26 = arith.constant 0 : index
    %c0_27 = arith.constant 0 : index
    %40 = vector.load %arg12[%c0_26, %c0_27] : memref<8x64xf32, #tpu.memory_space<vmem>>, vector<8x64xf32>
    tpu.vector_store %arg12[%c0_26, %c0_27], %39 {strides = array<i32>} : memref<8x64xf32, #tpu.memory_space<vmem>>, vector<8x64xf32>,
    return
  }
  func.func @transform_0(%arg0: i32) -> (i32, i32) {
    %c0_i32 = arith.constant 0 : i32
    %c0_i32_0 = arith.constant 0 : i32
    return %arg0, %c0_i32 : i32, i32
  }
  func.func @transform_1(%arg0: i32) -> (i32, i32) {
    %c0_i32 = arith.constant 0 : i32
    %c0_i32_0 = arith.constant 0 : i32
    return %arg0, %c0_i32 : i32, i32
  }
  func.func @transform_2(%arg0: i32) -> (i32, i32) {
    %c0_i32 = arith.constant 0 : i32
    %c0_i32_0 = arith.constant 0 : i32
    %c0_i32_1 = arith.constant 0 : i32
    return %c0_i32, %c0_i32_0 : i32, i32
  }
  func.func @transform_3(%arg0: i32) -> (i32, i32) {
    %c0_i32 = arith.constant 0 : i32
    %c0_i32_0 = arith.constant 0 : i32
    %c0_i32_1 = arith.constant 0 : i32
    return %c0_i32, %c0_i32_0 : i32, i32
  }
  func.func @transform_4(%arg0: i32) -> (i32, i32) {
    %c0_i32 = arith.constant 0 : i32
    %c0_i32_0 = arith.constant 0 : i32
    %c0_i32_1 = arith.constant 0 : i32
    return %c0_i32, %c0_i32_0 : i32, i32
  }
  func.func @transform_5(%arg0: i32) -> (i32, i32) {
    %c0_i32 = arith.constant 0 : i32
    %c0_i32_0 = arith.constant 0 : i32
    %c0_i32_1 = arith.constant 0 : i32
    return %c0_i32, %c0_i32_0 : i32, i32
  }
  func.func @transform_6(%arg0: i32) -> (i32, i32) {
    %c0_i32 = arith.constant 0 : i32
    %c0_i32_0 = arith.constant 0 : i32
    %c0_i32_1 = arith.constant 0 : i32
    return %c0_i32, %c0_i32_0 : i32, i32
  }
  func.func @transform_7(%arg0: i32) -> (i32, i32) {
    %c0_i32 = arith.constant 0 : i32
    %c0_i32_0 = arith.constant 0 : i32
    %c0_i32_1 = arith.constant 0 : i32
    return %c0_i32, %c0_i32_0 : i32, i32
  }
  func.func @transform_8(%arg0: i32) -> (i32, i32) {
    %c0_i32 = arith.constant 0 : i32
    %c0_i32_0 = arith.constant 0 : i32
    %c0_i32_1 = arith.constant 0 : i32
    return %c0_i32, %c0_i32_0 : i32, i32
  }
  func.func @transform_9(%arg0: i32) -> (i32, i32) {
    %c0_i32 = arith.constant 0 : i32
    %c0_i32_0 = arith.constant 0 : i32
    %c0_i32_1 = arith.constant 0 : i32
    return %c0_i32, %c0_i32_0 : i32, i32
  }
  func.func @transform_10(%arg0: i32) -> (i32, i32) {
    %c0_i32 = arith.constant 0 : i32
    %c0_i32_0 = arith.constant 0 : i32
    %c0_i32_1 = arith.constant 0 : i32
    return %c0_i32, %c0_i32_0 : i32, i32
  }
  func.func @transform_11(%arg0: i32) -> (i32, i32) {
    %c0_i32 = arith.constant 0 : i32
    %c0_i32_0 = arith.constant 0 : i32
    return %arg0, %c0_i32 : i32, i32
  }
}

</mosaic_0001>

<bundles_post_ra>
// kernel: tpu_custom_call.1
= control target key start
LH: loop header
LB: loop body
LE: loop exit
PB: predicated region body
PF: predicated region fallthrough
CT: control target
= control target key end

     0   :  { %16 = vsyncpa [#allocation3], 0  ;;  %s797_s0 = inlined_call_operand.vmem [shape: f32[8,64], index: 0, kind: input, shape index: {}]   ;;  %s798_s1 = inlined_call_operand.vmem [shape: f32[8,1], index: 1, kind: input, shape index: {}]   ;;  %s799_s2 = inlined_call_operand.vmem [shape: f32[1,64], index: 2, kind: input, shape index: {}]   ;;  %s800_s3 = inlined_call_operand.vmem [shape: f32[1,64], index: 3, kind: input, shape index: {}]   ;;  %s801_s4 = inlined_call_operand.vmem [shape: f32[64,128], index: 4, kind: input, shape index: {}]   ;;  %s802_s5 = inlined_call_operand.hbm [shape: f32[64,128], index: 5, kind: input, shape index: {}]   ;;  %s803_s6 = inlined_call_operand.vmem [shape: f32[1,128], index: 6, kind: input, shape index: {}]   ;;  %s804_s7 = inlined_call_operand.vmem [shape: f32[128,128], index: 7, kind: input, shape index: {}]   ;;  %s805_s8 = inlined_call_operand.vmem [shape: f32[1,128], index: 8, kind: input, shape index: {}]   ;;  %s806_s9 = inlined_call_operand.vmem [shape: f32[128,64], index: 9, kind: input, shape index: {}]   ;;  %s807_s10 = inlined_call_operand.vmem [shape: f32[1,64], index: 10, kind: input, shape index: {}]   ;;  %s808_s11 = inlined_call_operand.hbm [shape: f32[8,64], index: 11, kind: output, shape index: {}]  }
   0x1   :  { %17 = vsyncpa [#allocation4], 0  ;;  %s32_s19 = sshll.u32 %s802_s5, 4  ;;  %s517_s20 = smov [#allocation2]   ;;  %s33_s19 = int_to_ptr.hbm [resolvable:$true] %s32_s19 }
   0x2   :  { %s34_s21 = sshll.u32 %s517_s20, 4  ;;  %s518_s22 = smov 128   ;;  %s35_s21 = int_to_ptr.vmem [resolvable:$true] %s34_s21 }
   0x3   :  { %s519_s23 = smov 8  }
   0x4   :  { %40 = dma.hbm_to_vmem [thread:$0]  %s33_s19, 1024, %s35_s21, [#allocation3], %s518_s22, %s518_s22, %s519_s23  }
   0x5   :  { %513 = dma.done.wait [#allocation3], 1024  }
   0x6   :  { %514 = vsyncadd [#allocation3], 4294966272  ;;  %v520_v0 = vmov 0   ;;  %v56_v1 = vld [vmem:[%s798_s1] sm:$0xff]  ;;  %v242_v2 = vld [vmem:[#allocation2 + $0x38] sm:$0xff]  ;;  %vm243_vm12 = vcmask 523264  }
   0x7   :  { %451 = vset.pattern.permute.xlu0 %v520_v0  ;;  %v234_v3 = vld [vmem:[%s801_s4 + $0x38] sm:$0xff]  ;;  %v241_v4 = vld [vmem:[#allocation2 + $0x30] sm:$0xff]  ;;  %255 = vmatpush.msra.mxu0 %v242_v2  ;;  %v240_v6 = vld [vmem:[#allocation2 + $0x28] sm:$0xff]  ;;  %v521_v34 = vmov 2102212464   ;;  %s527_s16 = smov [#allocation5]  }
   0x8   :  { %60 = vperm.xlu0 %451, %v56_v1   ;;  %278 = vmatpush.msra.mxu1 %v234_v3  ;;  %v233_v5 = vld [vmem:[%s801_s4 + $0x30] sm:$0xff]  ;;  %v232_v7 = vld [vmem:[%s801_s4 + $0x28] sm:$0xff]  ;;  %v239_v8 = vld [vmem:[#allocation2 + $0x20] sm:$0xff]  ;;  %v522_v36 = vmov 920167782   ;;  %s421_s17 = sshll.u32 %s527_s16, 4  ;;  %s422_s17 = int_to_ptr.vmem [resolvable:$true] %s421_s17 }
   0x9   :  { %256 = vmatpush.msra.mxu0 %v241_v4  ;;  %v231_v9 = vld [vmem:[%s801_s4 + $0x20] sm:$0xff]  ;;  %v238_v11 = vld [vmem:[#allocation2 + $0x18] sm:$0xff]  ;;  %v237_v14 = vld [vmem:[#allocation2 + $0x10] sm:$0xff]  ;;  %v523_v39 = vmov 1326507024   ;;  %s423_s20 = sshll.u32 %s808_s11, 4  ;;  %s424_s20 = int_to_ptr.hbm [resolvable:$true] %s423_s20 }
   0xa   :  { %279 = vmatpush.msra.mxu1 %v233_v5  ;;  %v452_v10 = vld [vmem:[%s799_s2] ss:$0 sm:$0xff]  ;;  %v230_v12 = vld [vmem:[%s801_s4 + $0x18] sm:$0xff]  ;;  %v229_v15 = vld [vmem:[%s801_s4 + $0x10] sm:$0xff]  ;;  %v524_v41 = vmov 683565275  }
   0xb   :  { %257 = vmatpush.msra.mxu0 %v240_v6  ;;  %v453_v13 = vld [vmem:[%s800_s3] ss:$0 sm:$0xff]  ;;  %v236_v18 = vld [vmem:[#allocation2 + $0x8] sm:$0xff]  ;;  %v525_v43 = vmov 2475754826  }
   0xc   :  { %280 = vmatpush.msra.mxu1 %v232_v7  ;;  %v228_v19 = vld [vmem:[%s801_s4 + $0x8] sm:$0xff]  ;;  %v235_v21 = vld [vmem:[#allocation2] sm:$0xff]  ;;  %v526_v46 = vmov 2131351028  }
   0xd   :  { %258 = vmatpush.msra.mxu0 %v239_v8  ;;  %v227_v22 = vld [vmem:[%s801_s4] sm:$0xff] }
   0xe   :  { %281 = vmatpush.msra.mxu1 %v231_v9 }
   0xf   :  { %259 = vmatpush.msra.mxu0 %v238_v11 }
  0x10   :  { %282 = vmatpush.msra.mxu1 %v230_v12 }
  0x11   :  { %260 = vmatpush.msra.mxu0 %v237_v14 }
  0x12   :  { %283 = vmatpush.msra.mxu1 %v229_v15 }
  0x13   :  { %261 = vmatpush.msra.mxu0 %v236_v18 }
  0x14   :  { %284 = vmatpush.msra.mxu1 %v228_v19 }
  0x15   :  { %262 = vmatpush.msra.mxu0 %v235_v21 }
  0x16   :  { %285 = vmatpush.msra.mxu1 %v227_v22 }
  0x7a   :  { %v61_v16 = vpop.permute.xlu0 %60 }
  0x7b   :  { %v66_v17 = vmul.f32 %v452_v10, %v61_v16 }
  0x7d   :  { %v622_v20 = vadd.f32 %v453_v13, %v66_v17 }
  0x7f   :  { %v75_v23 = vand.u32 2139095040, %v622_v20  ;;  %v72_v26 = vand.u32 2147483647, %v622_v20  ;;  %vm74_vm13 = vcmp.lt.s32.totalorder %v622_v20, 0 }
  0x81   :  { %v76_v24 = vshrl.u32 %v75_v23, 23  ;;  %v79_v28 = vand.u32 8388607, %v72_v26  ;;  %vm73_vm14 = vcmp.le.f32.partialorder %v72_v26, 0.7853982 }
  0x83   :  { %v433_v25 = vadd.s32 4294967169, %v76_v24  ;;  %v80_v32 = vor.u32 8388608, %v79_v28 }
  0x85   :  { %v82_v27 = vadd.s32 1, %v433_v25  ;;  %v640_v53 = vshll.u32 %v80_v32, 8 }
  0x87   :  { %vm83_vm0 = vcmp.gt.s32.totalorder %v82_v27, 0  ;;  %v121_v63 = vand.u32 65535, %v640_v53  ;;  %v122_v2 = vshrl.u32 %v640_v53, 16 }
  0x88   :  { %v84_v29 = vsel %vm83_vm0, %v82_v27, 0 }
  0x89   :  { %v86_v30 = vand.u32 31, %v84_v29  ;;  %v633_v33 = vshrl.u32 %v84_v29, 5 }
  0x8b   :  { %v631_v31 = vsub.s32 32, %v86_v30  ;;  %v98_v35 = vshll.u32 %v521_v34, %v86_v30  ;;  %v101_v37 = vshll.u32 %v522_v36, %v86_v30  ;;  %v89_v42 = vshll.u32 %v524_v41, %v86_v30 }
  0x8c   :  { %v92_v45 = vshll.u32 %v525_v43, %v86_v30  ;;  %v95_v48 = vshll.u32 %v526_v46, %v86_v30  ;;  %vm107_vm1 = vcmp.lt.s32.totalorder %v633_v33, 4  ;;  %vm104_vm2 = vcmp.lt.s32.totalorder %v633_v33, 1 }
  0x8d   :  { %v99_v38 = vshrl.u32 %v522_v36, %v631_v31  ;;  %v102_v40 = vshrl.u32 %v523_v39, %v631_v31  ;;  %v90_v44 = vshrl.u32 %v525_v43, %v631_v31  ;;  %v93_v47 = vshrl.u32 %v526_v46, %v631_v31 }
  0x8e   :  { %v96_v49 = vshrl.u32 %v521_v34, %v631_v31  ;;  %vm106_vm3 = vcmp.lt.s32.totalorder %v633_v33, 3  ;;  %vm105_vm4 = vcmp.lt.s32.totalorder %v633_v33, 2  ;;  %v88_v27 = vshrl.u32 %v524_v41, %v631_v31 }
  0x8f   :  { %v100_v50 = vor.u32 %v99_v38, %v98_v35  ;;  %v103_v51 = vor.u32 %v102_v40, %v101_v37  ;;  %v91_v52 = vor.u32 %v90_v44, %v89_v42  ;;  %v94_v54 = vor.u32 %v93_v47, %v92_v45 }
  0x90   :  { %v97_v55 = vor.u32 %v96_v49, %v95_v48 }
  0x91   :  { %v113_v56 = vsel %vm107_vm1, %v100_v50, 920167782  ;;  %v117_v57 = vsel %vm107_vm1, %v103_v51, 1326507024  ;;  %v112_v58 = vsel %vm104_vm2, %v91_v52, %v94_v54  ;;  %v108_v35 = vsel %vm104_vm2, %v88_v27, %v91_v52 }
  0x92   :  { %v114_v59 = vsel %vm106_vm3, %v97_v55, %v113_v56  ;;  %v116_v60 = vsel %vm104_vm2, %v94_v54, %v97_v55  ;;  %v118_v62 = vsel %vm106_vm3, %v100_v50, %v117_v57  ;;  %v109_v23 = vsel %vm107_vm1, %v97_v55, 2102212464 }
  0x93   :  { %v115_v61 = vsel %vm105_vm4, %v112_v58, %v114_v59  ;;  %v119_v1 = vsel %vm105_vm4, %v116_v60, %v118_v62  ;;  %v110_v36 = vsel %vm106_vm3, %v94_v54, %v109_v23  ;;  %vm215_vm2 = vweird.f32 %v622_v20 }
  0x94   :  { %v145_v3 = vand.u32 65535, %v115_v61  ;;  %v146_v4 = vshrl.u32 %v115_v61, 16  ;;  %v123_v5 = vand.u32 65535, %v119_v1  ;;  %v124_v6 = vshrl.u32 %v119_v1, 16 }
  0x95   :  { %v111_v41 = vsel %vm105_vm4, %v108_v35, %v110_v36 }
  0x96   :  { %v148_v7 = vmul.u32 %v146_v4, %v121_v63  ;;  %v149_v8 = vmul.u32 %v145_v3, %v122_v2  ;;  %v126_v9 = vmul.u32 %v124_v6, %v121_v63  ;;  %v127_v10 = vmul.u32 %v123_v5, %v122_v2 }
  0x97   :  { %v147_v11 = vmul.u32 %v145_v3, %v121_v63  ;;  %v125_v13 = vmul.u32 %v123_v5, %v121_v63  ;;  %v150_v15 = vmul.u32 %v146_v4, %v122_v2  ;;  %v128_v16 = vmul.u32 %v124_v6, %v122_v2  ;;  %v55_v2 = vld [vmem:[%s797_s0] sm:$0xff] }
  0x98   :  { %v151_v12 = vshll.u32 %v148_v7, 16  ;;  %v129_v14 = vshll.u32 %v126_v9, 16  ;;  %v153_v17 = vshll.u32 %v149_v8, 16  ;;  %v131_v19 = vshll.u32 %v127_v10, 16  ;;  %437 = vmatmul.msk.f32.vlgmr.msra.gmra.mxu1 %vm243_vm12, %v55_v2 }
  0x99   :  { %v152_v32 = vshrl.u32 %v148_v7, 16  ;;  %v130_v37 = vshrl.u32 %v126_v9, 16  ;;  %v154_v39 = vshrl.u32 %v149_v8, 16  ;;  %v132_v42 = vshrl.u32 %v127_v10, 16 }
  0x9a   :  { %vm155_vm5 = vc.u32 %v147_v11, %v151_v12  ;;  %v157_v18 = vadd.s32 %v151_v12, %v147_v11  ;;  %vm133_vm6 = vc.u32 %v125_v13, %v129_v14  ;;  %v135_v21 = vadd.s32 %v129_v14, %v125_v13 }
  0x9b   :  { %v156_v22 = vsel %vm155_vm5, 1, %v520_v0  ;;  %v134_v24 = vsel %vm133_vm6, 1, %v520_v0  ;;  %v165_v46 = vmul.u32 %v640_v53, %v111_v41  ;;  %v324_v41 = vld [vmem:[%s804_s7 + $0x48] sm:$0xff] }
  0x9c   :  { %v158_v25 = vadd.s32 %v156_v22, %v150_v15  ;;  %vm159_vm7 = vc.u32 %v157_v18, %v153_v17  ;;  %v136_v28 = vadd.s32 %v134_v24, %v128_v16  ;;  %vm137_vm8 = vc.u32 %v135_v21, %v131_v19 }
  0x9d   :  { %v160_v29 = vsel %vm159_vm7, 1, %v520_v0  ;;  %v138_v30 = vsel %vm137_vm8, 1, %v520_v0  ;;  %v161_v0 = vadd.s32 %v157_v18, %v153_v17 }
  0x9e   :  { %v162_v34 = vadd.s32 %v160_v29, %v158_v25  ;;  %v140_v38 = vadd.s32 %v138_v30, %v136_v28 }
  0xa0   :  { %v163_v40 = vadd.s32 %v162_v34, %v152_v32  ;;  %v141_v31 = vadd.s32 %v140_v38, %v130_v37  ;;  %v330_v38 = vld [vmem:[%s804_s7 + $0x78] sm:$0xff] }
  0xa1   :  { %335 = vmatpush.msra.mxu2 %v330_v38 }
  0xa2   :  { %v164_v43 = vadd.s32 %v163_v40, %v154_v39  ;;  %v142_v44 = vadd.s32 %v141_v31, %v132_v42  ;;  %v329_v39 = vld [vmem:[%s804_s7 + $0x70] sm:$0xff]  ;;  %v328_v40 = vld [vmem:[%s804_s7 + $0x68] sm:$0xff]  ;;  %v326_v42 = vld [vmem:[%s804_s7 + $0x58] sm:$0xff] }
  0xa3   :  { %336 = vmatpush.msra.mxu2 %v329_v39  ;;  %v325_v31 = vld [vmem:[%s804_s7 + $0x50] sm:$0xff] }
  0xa4   :  { %v168_v45 = vadd.s32 1, %v164_v43  ;;  %vm167_vm9 = vc.u32 %v142_v44, %v161_v0  ;;  %v166_v58 = vadd.s32 %v161_v0, %v142_v44  ;;  %v322_v44 = vld [vmem:[%s804_s7 + $0x38] sm:$0xff]  ;;  %v321_v0 = vld [vmem:[%s804_s7 + $0x30] sm:$0xff] }
  0xa5   :  { %337 = vmatpush.msra.mxu2 %v328_v40 }
  0xa6   :  { %v169_v47 = vsel %vm167_vm9, %v168_v45, %v164_v43  ;;  %v323_v43 = vld [vmem:[%s804_s7 + $0x40] sm:$0xff]  ;;  %v320_v45 = vld [vmem:[%s804_s7 + $0x28] sm:$0xff] }
  0xa7   :  { %v170_v48 = vadd.s32 %v169_v47, %v165_v46  ;;  %v319_v46 = vld [vmem:[%s804_s7 + $0x20] sm:$0xff]  ;;  %v318_v47 = vld [vmem:[%s804_s7 + $0x18] sm:$0xff] }
  0xa9   :  { %v171_v49 = vadd.s32 536870912, %v170_v48 }
  0xab   :  { %v172_v50 = vshrl.u32 %v171_v49, 30  ;;  %v317_v49 = vld [vmem:[%s804_s7 + $0x10] sm:$0xff] }
  0xad   :  { %v173_v51 = vshll.u32 %v172_v50, 30  ;;  %v196_v9 = vsub.s32 4, %v172_v50 }
  0xaf   :  { %v174_v52 = vsub.s32 %v170_v48, %v173_v51  ;;  %v197_v14 = vsel %vm74_vm13, %v196_v9, %v172_v50  ;;  %v454_v50 = vld [vmem:[%s803_s6] ss:$0 sm:$0xff] }
  0xb0   :  { %v199_v17 = vsel %vm73_vm14, 0, %v197_v14  ;;  %v387_v9 = vld [vmem:[%s806_s9 + $0x60] sm:$0xff]  ;;  %v382_v14 = vld [vmem:[%s806_s9 + $0x38] sm:$0xff] }
  0xb1   :  { %vm175_vm10 = vcmp.lt.s32.totalorder %v174_v52, 0  ;;  %v176_v54 = vsub.s32 0, %v174_v52  ;;  %v216_v23 = vadd.s32 3, %v199_v17  ;;  %v379_v17 = vld [vmem:[%s806_s9 + $0x20] sm:$0xff] }
  0xb3   :  { %v177_v55 = vsel %vm175_vm10, %v176_v54, %v174_v52  ;;  %v217_v28 = vand.u32 3, %v216_v23 }
  0xb4   :  { %v178_v56 = vclz %v177_v55  ;;  %v315_v55 = vld [vmem:[%s804_s7] sm:$0xff] }
  0xb5   :  { %vm219_vm15 = vcmp.eq.s32.totalorder %v217_v28, 0  ;;  %vm222_vm0 = vcmp.eq.s32.totalorder %v217_v28, 2  ;;  %vm218_vm1 = vcmp.lt.s32.totalorder %v217_v28, 2 }
  0xb6   :  { %v434_v57 = vadd.s32 4294967294, %v178_v56 }
  0xb8   :  { %vm435_vm11 = vcmp.lt.s32.totalorder %v434_v57, 0 }
  0xb9   :  { %v181_v33 = vsel %vm435_vm11, 0, %v434_v57 }
  0xba   :  { %v182_v59 = vsub.s32 32, %v181_v33  ;;  %v186_v60 = vsub.s32 4294967266, %v181_v33  ;;  %v183_v61 = vshll.u32 %v174_v52, %v181_v33  ;;  %v316_v52 = vld [vmem:[%s804_s7 + $0x8] sm:$0xff] }
  0xbc   :  { %v184_v62 = vshrl.u32 %v166_v58, %v182_v59  ;;  %v187_v53 = vadd.s32 127, %v186_v60 }
  0xbe   :  { %v185_v63 = vor.u32 %v184_v62, %v183_v61  ;;  %v188_v1 = vshll.u32 %v187_v53, 23 }
  0xc0   :  { %v189_v3 = vor.u32 4788187, %v188_v1  ;;  %v192_v5 = vcvt.s32.f32 %v185_v63 }
  0xc2   :  { %v190_v4 = vand.u32 2147483647, %v189_v3 }
  0xc4   :  { %v193_v6 = vmul.f32 %v192_v5, %v190_v4 }
  0xc6   :  { %v194_v7 = vxor.u32 2147483648, %v193_v6 }
  0xc8   :  { %v195_v8 = vsel %vm74_vm13, %v194_v7, %v193_v6  ;;  %v390_v6 = vld [vmem:[%s806_s9 + $0x78] sm:$0xff]  ;;  %v389_v7 = vld [vmem:[%s806_s9 + $0x70] sm:$0xff] }
  0xc9   :  { %v198_v10 = vsel %vm73_vm14, %v622_v20, %v195_v8  ;;  %v327_v20 = vld [vmem:[%s804_s7 + $0x60] sm:$0xff]  ;;  %395 = vmatpush.msra.mxu3 %v390_v6  ;;  %v388_v8 = vld [vmem:[%s806_s9 + $0x68] sm:$0xff] }
  0xca   :  { %v200_v11 = vmul.f32 %v198_v10, %v198_v10  ;;  %338 = vmatpush.msra.mxu2 %v327_v20 }
  0xcb   :  { %396 = vmatpush.msra.mxu3 %v389_v7 }
  0xcc   :  { %v201_v12 = vmul.f32 -0.001358992, %v200_v11  ;;  %v208_v13 = vmul.f32 -0.00019511016, %v200_v11  ;;  %339 = vmatpush.msra.mxu2 %v326_v42  ;;  %v456_v42 = vld [vmem:[%s807_s10] ss:$0 sm:$0xff] }
  0xcd   :  { %397 = vmatpush.msra.mxu3 %v388_v8 }
  0xce   :  { %v202_v15 = vadd.f32 0.041655596, %v201_v12  ;;  %v209_v16 = vadd.f32 0.008332121, %v208_v13  ;;  %340 = vmatpush.msra.mxu2 %v325_v31  ;;  %v384_v12 = vld [vmem:[%s806_s9 + $0x48] sm:$0xff]  ;;  %v383_v13 = vld [vmem:[%s806_s9 + $0x40] sm:$0xff] }
  0xcf   :  { %398 = vmatpush.msra.mxu3 %v387_v9 }
  0xd0   :  { %v203_v18 = vmul.f32 %v202_v15, %v200_v11  ;;  %v210_v19 = vmul.f32 %v209_v16, %v200_v11  ;;  %341 = vmatpush.msra.mxu2 %v324_v41  ;;  %v381_v15 = vld [vmem:[%s806_s9 + $0x30] sm:$0xff]  ;;  %v380_v16 = vld [vmem:[%s806_s9 + $0x28] sm:$0xff] }
  0xd2   :  { %v204_v21 = vadd.f32 -0.4999988, %v203_v18  ;;  %v211_v22 = vadd.f32 -0.16666654, %v210_v19  ;;  %342 = vmatpush.msra.mxu2 %v323_v43  ;;  %v378_v18 = vld [vmem:[%s806_s9 + $0x18] sm:$0xff]  ;;  %v377_v19 = vld [vmem:[%s806_s9 + $0x10] sm:$0xff] }
  0xd4   :  { %v205_v24 = vmul.f32 %v204_v21, %v200_v11  ;;  %v212_v25 = vmul.f32 %v211_v22, %v200_v11  ;;  %343 = vmatpush.msra.mxu2 %v322_v44  ;;  %v385_v11 = vld [vmem:[%s806_s9 + $0x50] sm:$0xff]  ;;  %v455_v21 = vld [vmem:[%s805_s8] ss:$0 sm:$0xff]  ;;  %v376_v22 = vld [vmem:[%s806_s9 + $0x8] sm:$0xff] }
  0xd6   :  { %v206_v27 = vadd.f32 1.0, %v205_v24  ;;  %v213_v26 = vadd.f32 1.0, %v212_v25  ;;  %344 = vmatpush.msra.mxu2 %v321_v0  ;;  %v375_v24 = vld [vmem:[%s806_s9] sm:$0xff] }
  0xd8   :  { %v214_v29 = vmul.f32 %v213_v26, %v198_v10  ;;  %v223_v30 = vxor.u32 2147483648, %v206_v27  ;;  %345 = vmatpush.msra.mxu2 %v320_v45  ;;  %v386_v10 = vld [vmem:[%s806_s9 + $0x58] sm:$0xff] }
  0xd9   :  { %399 = vmatpush.msra.mxu3 %v386_v10 }
  0xda   :  { %v220_v32 = vxor.u32 2147483648, %v214_v29  ;;  %v224_v35 = vsel %vm222_vm0, %v223_v30, %v214_v29  ;;  %346 = vmatpush.msra.mxu2 %v319_v46 }
  0xdb   :  { %400 = vmatpush.msra.mxu3 %v385_v11 }
  0xdc   :  { %v221_v34 = vsel %vm219_vm15, %v206_v27, %v220_v32  ;;  %347 = vmatpush.msra.mxu2 %v318_v47 }
  0xdd   :  { %v225_v36 = vsel %vm218_vm1, %v221_v34, %v224_v35  ;;  %401 = vmatpush.msra.mxu3 %v384_v12 }
  0xde   :  { %v226_v37 = vsel %vm215_vm2, nan, %v225_v36  ;;  %348 = vmatpush.msra.mxu2 %v317_v49 }
  0xdf   :  { %436 = vmatmul.msk.f32.vlgmr.msra.gmra.mxu0 %vm243_vm12, %v226_v37  ;;  %402 = vmatpush.msra.mxu3 %v383_v13 }
  0xe0   :  { %349 = vmatpush.msra.mxu2 %v316_v52 }
  0xe1   :  { %403 = vmatpush.msra.mxu3 %v382_v14 }
  0xe2   :  { %350 = vmatpush.msra.mxu2 %v315_v55 }
  0xe3   :  { %404 = vmatpush.msra.mxu3 %v381_v15 }
  0xe5   :  { %405 = vmatpush.msra.mxu3 %v380_v16 }
  0xe7   :  { %406 = vmatpush.msra.mxu3 %v379_v17 }
  0xe9   :  { %407 = vmatpush.msra.mxu3 %v378_v18 }
  0xeb   :  { %408 = vmatpush.msra.mxu3 %v377_v19 }
  0xed   :  { %409 = vmatpush.msra.mxu3 %v376_v22 }
  0xef   :  { %410 = vmatpush.msra.mxu3 %v375_v24 }
 0x115   :  { %v287_v48 = vpop.f32.mrf.mxu1 }
 0x15c   :  { %v264_v51 = vpop.f32.mrf.mxu0 }
 0x15d   :  { %v288_v54 = vadd.f32 %v287_v48, %v264_v51 }
 0x15f   :  { %v294_v56 = vadd.f32 %v454_v50, %v288_v54 }
 0x161   :  { %v438_v57 = vmul.f32 -1.442695, %v294_v56 }
 0x163   :  { %457 = vpow2.f32 %v438_v57 }
 0x169   :  { %v458_v33 = vpop.eup %457 }
 0x16a   :  { %v298_v58 = vadd.f32 1.0, %v458_v33 }
 0x16c   :  { %459 = vrcp.f32 %v298_v58  ;;  %v310_v62 = vand.u32 2147483648, %v298_v58  ;;  %v308_v63 = vand.u32 2147483647, %v298_v58  ;;  %vm304_vm4 = vweird.f32 %v298_v58 }
 0x16e   :  { %v311_v2 = vor.u32 1.1754944e-38, %v310_v62  ;;  %vm309_vm6 = vcmp.eq.f32.partialorder %v308_v63, 8.507059e+37 }
 0x172   :  { %v460_v59 = vpop.eup %459 }
 0x173   :  { %v300_v60 = vmul.f32 %v460_v59, %v298_v58  ;;  %vm305_vm3 = vweird.f32 %v460_v59 }
 0x174   :  { %vm306_vm5 = vmor %vm304_vm4, %vm305_vm3 }
 0x175   :  { %v301_v61 = vsub.f32 1.0, %v300_v60 }
 0x177   :  { %v302_v53 = vmul.f32 %v460_v59, %v301_v61 }
 0x179   :  { %v303_v1 = vadd.f32 %v460_v59, %v302_v53 }
 0x17b   :  { %v307_v3 = vsel %vm306_vm5, %v460_v59, %v303_v1 }
 0x17c   :  { %v312_v4 = vsel %vm309_vm6, %v311_v2, %v307_v3 }
 0x17d   :  { %v314_v5 = vmul.f32 %v312_v4, %v294_v56 }
 0x17f   :  { %351 = vmatmul.f32.vlgmr.msra.gmra.mxu2 %v314_v5 }
 0x202   :  { %v352_v23 = vpop.f32.mrf.mxu2 }
 0x203   :  { %v353_v25 = vadd.f32 %v455_v21, %v352_v23 }
 0x205   :  { %v439_v27 = vmul.f32 -1.442695, %v353_v25 }
 0x207   :  { %461 = vpow2.f32 %v439_v27 }
 0x20d   :  { %v462_v26 = vpop.eup %461 }
 0x20e   :  { %v358_v28 = vadd.f32 1.0, %v462_v26 }
 0x210   :  { %463 = vrcp.f32 %v358_v28  ;;  %v370_v34 = vand.u32 2147483648, %v358_v28  ;;  %v368_v36 = vand.u32 2147483647, %v358_v28  ;;  %vm364_vm8 = vweird.f32 %v358_v28 }
 0x212   :  { %v371_v38 = vor.u32 1.1754944e-38, %v370_v34  ;;  %vm369_vm10 = vcmp.eq.f32.partialorder %v368_v36, 8.507059e+37 }
 0x216   :  { %v464_v29 = vpop.eup %463 }
 0x217   :  { %v360_v30 = vmul.f32 %v464_v29, %v358_v28  ;;  %vm365_vm7 = vweird.f32 %v464_v29 }
 0x218   :  { %vm366_vm9 = vmor %vm364_vm8, %vm365_vm7 }
 0x219   :  { %v361_v32 = vsub.f32 1.0, %v360_v30 }
 0x21b   :  { %v362_v35 = vmul.f32 %v464_v29, %v361_v32 }
 0x21d   :  { %v363_v37 = vadd.f32 %v464_v29, %v362_v35 }
 0x21f   :  { %v367_v39 = vsel %vm366_vm9, %v464_v29, %v363_v37 }
 0x220   :  { %v372_v40 = vsel %vm369_vm10, %v371_v38, %v367_v39 }
 0x221   :  { %v374_v20 = vmul.f32 %v372_v40, %v353_v25 }
 0x223   :  { %411 = vmatmul.f32.vlgmr.msra.gmra.mxu3 %v374_v20 }
 0x2a6   :  { %v412_v31 = vpop.f32.mrf.mxu3 }
 0x2a7   :  { %v413_v41 = vadd.f32 %v456_v42, %v412_v31 }
 0x2a9   :  { %415 = vst.msk [vmem:[#allocation5] sm:$0xff] %vm243_vm12, %v413_v41 }
 0x2aa   :  { %426 = dma.vmem_to_hbm [thread:$0]  %s422_s17, 128, %s424_s20, [#allocation4]  }
 0x2ab   :  { %515 = dma.done.wait [#allocation4], 128  }
 0x2ac   :  { %516 = vsyncadd [#allocation4], 4294967168 }
 0x2ad   :  { %431 = vsyncpa [#allocation3], 1 }
 0x2ae   :  { %432 = vsyncpa [#allocation4], 1 }

</bundles_post_ra>
